<compile_context>
chip_gen: v6e
topology: v6e:2x2x1
jax: 0.10.0
libtpu: 0.0.40
codegen_flags: <defaults>
</compile_context>

<pallas_src>
import jax
import jax.numpy as jnp
from jax.experimental import pallas as pl
from jax.experimental.pallas import tpu as pltpu

_EPS = 1e-5          # nn.InstanceNorm3d default eps
_NEG_SLOPE = 0.01    # nn.LeakyReLU default negative_slope
_VMEM_LIMIT = 48 * 1024 * 1024   # explicit scoped-VMEM budget (safe on v7x 64 MiB)


# ---------------------------------------------------------------------------
# Pallas kernels
# ---------------------------------------------------------------------------
def _conv_gemm_kernel(w_ref, p_ref, b_ref, o_ref, acc_ref):
    """One (batch, M-tile) output block; K is the (last, 'arbitrary') grid axis.

    w_ref: (C_out, TK)  p_ref: (TK, TM)  b_ref: (C_out, 1)
    o_ref: (C_out, TM)  acc_ref: (C_out, TM) f32 scratch (resident across K).
    """
    k = pl.program_id(2)

    @pl.when(k == 0)
    def _():
        # Conv bias folded into the accumulator init.
        acc_ref[...] = jnp.broadcast_to(b_ref[...], acc_ref.shape)

    acc_ref[...] += jnp.dot(
        w_ref[...], p_ref[...], preferred_element_type=jnp.float32
    )

    @pl.when(k == pl.num_programs(2) - 1)
    def _():
        o_ref[...] = acc_ref[...].astype(o_ref.dtype)


def _instnorm_lrelu_kernel(x_ref, o_ref):
    """Fused InstanceNorm3d (affine=False) + LeakyReLU over one (n, C-tile) block.

    x_ref / o_ref: (TC, M) — each row is one (n, c) instance; spatial on lanes.
    """
    x = x_ref[...].astype(jnp.float32)
    mean = jnp.mean(x, axis=-1, keepdims=True)
    xc = x - mean
    var = jnp.mean(xc * xc, axis=-1, keepdims=True)      # biased var (torch IN)
    inv = jax.lax.rsqrt(var + _EPS)                       # one rsqrt per row (EUP)
    y = xc * inv                                          # broadcast multiply (VPU)
    o_ref[...] = jnp.where(y >= 0, y, _NEG_SLOPE * y).astype(o_ref.dtype)


# ---------------------------------------------------------------------------
# Wrapper helpers
# ---------------------------------------------------------------------------
def _pick_tile(dim, preferred, align):
    """Largest multiple of `align`, <= preferred, that divides `dim`; else full dim."""
    if dim % align != 0:
        return dim
    t = (min(preferred, dim) // align) * align
    while t >= align:
        if dim % t == 0:
            return t
        t -= align
    return dim


def _pick_channel_tile(c, m, bytes_per_elem=4, budget_bytes=4 << 20):
    """Channel tile for the norm kernel: keep (TC, M) blocks ~<= 4 MiB."""
    if c % 8 != 0:
        return c
    tc = c
    while tc % 16 == 0 and tc * m * bytes_per_elem > budget_bytes:
        tc //= 2
    return tc


def _im2col_3d(x, ksize, stride, padding):
    """(N, C, D, H, W) -> patches (N, C*kd*kh*kw, OD*OH*OW).  Layout plumbing only."""
    n, c, d, h, w = x.shape
    kd, kh, kw = ksize
    sd, sh, sw = stride
    pd, ph, pw = padding
    od = (d + 2 * pd - kd) // sd + 1
    oh = (h + 2 * ph - kh) // sh + 1
    ow = (w + 2 * pw - kw) // sw + 1
    xp = jnp.pad(x, ((0, 0), (0, 0), (pd, pd), (ph, ph), (pw, pw)))
    taps = []
    for i in range(kd):
        for j in range(kh):
            for l in range(kw):
                sl = xp[:, :, i:i + sd * od:sd, j:j + sh * oh:sh, l:l + sw * ow:sw]
                taps.append(sl.reshape(n, c, od * oh * ow))
    # K ordering = (ci, kd, kh, kw) to match weight.reshape(C_out, -1).
    patches = jnp.stack(taps, axis=2).reshape(n, c * kd * kh * kw, od * oh * ow)
    return patches, (od, oh, ow)


def _conv_in_lrelu_block(x, w, b, stride, padding):
    """Conv3d(+bias) -> InstanceNorm3d -> LeakyReLU, all compute in Pallas."""
    n = x.shape[0]
    out_c = w.shape[0]
    patches, (od, oh, ow) = _im2col_3d(x, w.shape[2:], stride, padding)
    k_dim, m_dim = patches.shape[1], patches.shape[2]
    w2d = w.reshape(out_c, k_dim).astype(jnp.float32)
    b2d = b.reshape(out_c, 1).astype(jnp.float32)

    tm = _pick_tile(m_dim, 512, 128)   # lane-dense spatial tiles (full dim if small)
    tk = _pick_tile(k_dim, 512, 8)     # reduction tiles

    conv = pl.pallas_call(
        _conv_gemm_kernel,
        out_shape=jax.ShapeDtypeStruct((n, out_c, m_dim), jnp.float32),
        grid_spec=pltpu.PrefetchScalarGridSpec(
            num_scalar_prefetch=0,
            grid=(n, m_dim // tm, k_dim // tk),
            in_specs=[
                pl.BlockSpec((out_c, tk), lambda bi, mi, ki: (0, ki)),
                pl.BlockSpec((None, tk, tm), lambda bi, mi, ki: (bi, ki, mi)),
                pl.BlockSpec((out_c, 1), lambda bi, mi, ki: (0, 0)),
            ],
            out_specs=pl.BlockSpec((None, out_c, tm), lambda bi, mi, ki: (bi, 0, mi)),
            scratch_shapes=[pltpu.VMEM((out_c, tm), jnp.float32)],
        ),
        compiler_params=pltpu.CompilerParams(
            dimension_semantics=("parallel", "parallel", "arbitrary"),
            vmem_limit_bytes=_VMEM_LIMIT,
        ),
    )(w2d, patches, b2d)

    tc = _pick_channel_tile(out_c, m_dim)
    y = pl.pallas_call(
        _instnorm_lrelu_kernel,
        out_shape=jax.ShapeDtypeStruct((n, out_c, m_dim), x.dtype),
        grid_spec=pltpu.PrefetchScalarGridSpec(
            num_scalar_prefetch=0,
            grid=(n, out_c // tc),
            in_specs=[pl.BlockSpec((None, tc, m_dim), lambda bi, ci: (bi, ci, 0))],
            out_specs=pl.BlockSpec((None, tc, m_dim), lambda bi, ci: (bi, ci, 0)),
        ),
        compiler_params=pltpu.CompilerParams(
            dimension_semantics=("parallel", "parallel"),
            vmem_limit_bytes=_VMEM_LIMIT,
        ),
    )(conv)

    return y.reshape(n, out_c, od, oh, ow)


def unet_conv3d_forward(x, params):
    """UnetConv3D.forward: conv1 (stride 2) block then conv2 (stride 1) block."""
    w1, b1, w2, b2 = params
    y = _conv_in_lrelu_block(x, w1, b1, stride=(2, 2, 2), padding=(1, 1, 1))
    y = _conv_in_lrelu_block(y, w2, b2, stride=(1, 1, 1), padding=(1, 1, 1))
    return y


# ---------------------------------------------------------------------------
# Pure-JAX reference (mirrors the PyTorch module) for cross-checking
# ---------------------------------------------------------------------------
def _reference_forward(x, params):
    w1, b1, w2, b2 = params

    def block(z, w, b, stride):
        y = jax.lax.conv_general_dilated(
            z, w, window_strides=stride, padding=[(1, 1)] * 3,
            dimension_numbers=("NCDHW", "OIDHW", "NCDHW"))
        y = y + b.reshape(1, -1, 1, 1, 1)
        mean = jnp.mean(y, axis=(2, 3, 4), keepdims=True)
        var = jnp.var(y, axis=(2, 3, 4), keepdims=True)
        y = (y - mean) / jnp.sqrt(var + _EPS)
        return jnp.where(y >= 0, y, _NEG_SLOPE * y)

    y = block(x, w1, b1, (2, 2, 2))
    y = block(y, w2, b2, (1, 1, 1))
    return y


if __name__ == "__main__":
    key = jax.random.PRNGKey(0)
    k_x, k_w1, k_b1, k_w2, k_b2 = jax.random.split(key, 5)

    in_size, out_size = 4, 8
    x = jax.random.normal(k_x, (2, in_size, 8, 8, 8), dtype=jnp.float32)
    w1 = 0.1 * jax.random.normal(k_w1, (out_size, in_size, 3, 3, 3), jnp.float32)
    b1 = 0.1 * jax.random.normal(k_b1, (out_size,), jnp.float32)
    w2 = 0.1 * jax.random.normal(k_w2, (out_size, out_size, 3, 3, 3), jnp.float32)
    b2 = 0.1 * jax.random.normal(k_b2, (out_size,), jnp.float32)
    params = (w1, b1, w2, b2)

    y = unet_conv3d_forward(x, params)
    jax.block_until_ready(y)

    ref = _reference_forward(x, params)
    assert y.shape == ref.shape == (2, out_size, 4, 4, 4)
    assert y.dtype == x.dtype
    assert jnp.allclose(y, ref, atol=1e-4, rtol=1e-4), float(jnp.max(jnp.abs(y - ref)))

    print("KERNEL_OK")
</pallas_src>

<mosaic_0001>
module attributes {stable_mosaic.version = 11 : i64} {
  func.func @_conv_gemm_kernel(%arg0: i32, %arg1: i32, %arg2: i32, %arg3: memref<8x108xf32, #tpu.memory_space<vmem>>, %arg4: memref<1x108x64xf32, #tpu.memory_space<vmem>>, %arg5: memref<8x1xf32, #tpu.memory_space<vmem>>, %arg6: memref<1x8x64xf32, #tpu.memory_space<vmem>>, %arg7: memref<8x64xf32, #tpu.memory_space<vmem>>) attributes {dimension_semantics = [#tpu.dimension_semantics<parallel>, #tpu.dimension_semantics<parallel>, #tpu.dimension_semantics<arbitrary>], iteration_bounds = array<i64: 2, 1, 1>, scalar_prefetch = 0 : i64, scratch_operands = 1 : i64, tpu.core_type = #tpu.core_type<tc>, window_params = [{transform_indices = @transform_0, window_bounds = array<i64: 8, 108>}, {transform_indices = @transform_1, window_bounds = array<i64: 1, 108, 64>}, {pipeline_mode = #tpu.pipeline_mode<synchronous>, transform_indices = @transform_2, window_bounds = array<i64: 8, 1>}, {transform_indices = @transform_3, window_bounds = array<i64: 1, 8, 64>}]} {
    %c0_i32 = arith.constant 0 : i32
    %0 = arith.cmpi eq, %arg2, %c0_i32 : i32
    %1 = arith.extui %0 : i1 to i32
    %c0_i32_0 = arith.constant 0 : i32
    %2 = arith.cmpi ne, %1, %c0_i32_0 : i32
    scf.if %2 {
      %c0_11 = arith.constant 0 : index
      %c0_12 = arith.constant 0 : index
      %13 = vector.load %arg5[%c0_11, %c0_12] : memref<8x1xf32, #tpu.memory_space<vmem>>, vector<8x1xf32>
      %14 = vector.shape_cast %13 : vector<8x1xf32> to vector<8x1xf32>
      %15 = vector.broadcast %14 : vector<8x1xf32> to vector<8x64xf32>
      %c0_13 = arith.constant 0 : index
      %c0_14 = arith.constant 0 : index
      %16 = vector.load %arg7[%c0_13, %c0_14] : memref<8x64xf32, #tpu.memory_space<vmem>>, vector<8x64xf32>
      tpu.vector_store %arg7[%c0_13, %c0_14], %15 {strides = array<i32>} : memref<8x64xf32, #tpu.memory_space<vmem>>, vector<8x64xf32>,
    } else {
    }
    %c0 = arith.constant 0 : index
    %c0_1 = arith.constant 0 : index
    %3 = vector.load %arg7[%c0, %c0_1] : memref<8x64xf32, #tpu.memory_space<vmem>>, vector<8x64xf32>
    %c0_2 = arith.constant 0 : index
    %c0_3 = arith.constant 0 : index
    %4 = vector.load %arg3[%c0_2, %c0_3] : memref<8x108xf32, #tpu.memory_space<vmem>>, vector<8x108xf32>
    %c0_4 = arith.constant 0 : index
    %c0_5 = arith.constant 0 : index
    %c0_6 = arith.constant 0 : index
    %5 = vector.load %arg4[%c0_4, %c0_5, %c0_6] : memref<1x108x64xf32, #tpu.memory_space<vmem>>, vector<1x108x64xf32>
    %6 = vector.shape_cast %5 : vector<1x108x64xf32> to vector<108x64xf32>
    %cst = arith.constant dense<0.000000e+00> : vector<8x64xf32>
    %7 = tpu.matmul %4, %6, %cst {dimension_numbers = #tpu.dot_dimension_numbers<[1], [0], [0], [1], [0, 0, 1, 1], [], []>} : vector<8x108xf32>, vector<108x64xf32>, vector<8x64xf32> -> vector<8x64xf32>
    %8 = arith.addf %3, %7 : vector<8x64xf32>
    %c0_7 = arith.constant 0 : index
    %c0_8 = arith.constant 0 : index
    %9 = vector.load %arg7[%c0_7, %c0_8] : memref<8x64xf32, #tpu.memory_space<vmem>>, vector<8x64xf32>
    tpu.vector_store %arg7[%c0_7, %c0_8], %8 {strides = array<i32>} : memref<8x64xf32, #tpu.memory_space<vmem>>, vector<8x64xf32>,
    %c0_i32_9 = arith.constant 0 : i32
    %10 = arith.cmpi eq, %arg2, %c0_i32_9 : i32
    %11 = arith.extui %10 : i1 to i32
    %c0_i32_10 = arith.constant 0 : i32
    %12 = arith.cmpi ne, %11, %c0_i32_10 : i32
    scf.if %12 {
      %c0_11 = arith.constant 0 : index
      %c0_12 = arith.constant 0 : index
      %13 = vector.load %arg7[%c0_11, %c0_12] : memref<8x64xf32, #tpu.memory_space<vmem>>, vector<8x64xf32>
      %c0_13 = arith.constant 0 : index
      %c0_14 = arith.constant 0 : index
      %c0_15 = arith.constant 0 : index
      %14 = vector.load %arg6[%c0_13, %c0_14, %c0_15] : memref<1x8x64xf32, #tpu.memory_space<vmem>>, vector<1x8x64xf32>
      %15 = vector.shape_cast %14 : vector<1x8x64xf32> to vector<8x64xf32>
      %16 = vector.shape_cast %13 : vector<8x64xf32> to vector<1x8x64xf32>
      tpu.vector_store %arg6[%c0_13, %c0_14, %c0_15], %16 {strides = array<i32>} : memref<1x8x64xf32, #tpu.memory_space<vmem>>, vector<1x8x64xf32>,
    } else {
    }
    return
  }
  func.func @transform_0(%arg0: i32, %arg1: i32, %arg2: i32) -> (i32, i32) {
    %c0_i32 = arith.constant 0 : i32
    %c0_i32_0 = arith.constant 0 : i32
    return %c0_i32, %arg2 : i32, i32
  }
  func.func @transform_1(%arg0: i32, %arg1: i32, %arg2: i32) -> (i32, i32, i32) {
    %c0_i32 = arith.constant 0 : i32
    return %arg0, %arg2, %arg1 : i32, i32, i32
  }
  func.func @transform_2(%arg0: i32, %arg1: i32, %arg2: i32) -> (i32, i32) {
    %c0_i32 = arith.constant 0 : i32
    %c0_i32_0 = arith.constant 0 : i32
    %c0_i32_1 = arith.constant 0 : i32
    return %c0_i32, %c0_i32_0 : i32, i32
  }
  func.func @transform_3(%arg0: i32, %arg1: i32, %arg2: i32) -> (i32, i32, i32) {
    %c0_i32 = arith.constant 0 : i32
    %c0_i32_0 = arith.constant 0 : i32
    return %arg0, %c0_i32, %arg1 : i32, i32, i32
  }
}

</mosaic_0001>

<bundles_post_ra>
// kernel: tpu_custom_call.1
= control target key start
LH: loop header
LB: loop body
LE: loop exit
PB: predicated region body
PF: predicated region fallthrough
CT: control target
= control target key end

     0   :  { %8 = vsyncpa [#allocation4], 0  ;;  %s810_s0 = inlined_call_operand.vmem [shape: f32[8,108], index: 0, kind: input, shape index: {}]   ;;  %s811_s1 = inlined_call_operand.vmem [shape: f32[2,108,64], index: 1, kind: input, shape index: {}]   ;;  %s812_s2 = inlined_call_operand.vmem [shape: f32[8,1], index: 2, kind: input, shape index: {}]   ;;  %s813_s3 = inlined_call_operand.hbm [shape: f32[2,8,64], index: 3, kind: output, shape index: {}]  }
   0x1   :  { %10 = vsyncpa [#allocation4 + $0x1], 0  ;;  %s680_s12 = smov 0   ;;  %s682_s13 = smov 0  }
   0x2   :  { %s684_s14 = smov 0   ;;  %s686_s15 = smov 0  }
   0x3   :  { %s688_s16 = smov 0   ;;  %s690_s17 = smov 0  }
   0x4 LB: > { %s458_s18 = sadd.s32 4294967295, %s654_s17   ;;  %s459_s19 = sadd.s32 4294967294, %s654_s17   ;;  %s654_s17 = sphi %s690_s17, %s16_s17   ;;  %s650_s16 = sphi %s688_s16, %s820_s16   ;;  %s646_s15 = sphi %s686_s15, %s819_s15   ;;  %s642_s14 = sphi %s684_s14, %s818_s14   ;;  %s638_s13 = sphi %s682_s13, %s817_s13   ;;  %s634_s12 = sphi %s680_s12, %s816_s12  }
   0x5   : > { %s35_s20 = sadd.s32 1, %s650_s16  ;;  %s121_s21 = sadd.s32 1, %s642_s14 }
   0x6   : > { %p37_p0 = scmp.ge.s32.totalorder %s35_s20, 2  ;;  %p131_p1 = scmp.ne.s32.totalorder %s642_s14, %s638_s13 }
   0x7   : > { %p132_p2 = scmp.eq.s32.totalorder %s458_s18, 1  ;;  %p137_p3 = scmp.ne.s32.totalorder %s638_s13, %s634_s12 }
   0x8   : > { %s822_s20 = smov (%p37_p0, %s35_s20), 0  ;;  %p138_p5 = scmp.eq.s32.totalorder %s459_s19, 1 }
   0x9   : > { %p720_p4 = por %p132_p2, %p131_p1  ;;  %s116_s23 = ssub.s32 %s650_s16, %s822_s20 }
   0xa   : > { %p463_p6 = scmp.ge.s32.totalorder %s654_s17, 1  ;;  %p119_p7 = scmp.eq.s32.totalorder %s116_s23, 0 }
   0xb   : > { %p727_p8 = por %p138_p5, %p137_p3  ;;  %p182_p9 = scmp.lt.s32.totalorder %s654_s17, 3 }
   0xc   : > { %s733_s25 = scalar_select %p119_p7, %s642_s14, %s121_s21  }
   0xd   : > { %p183_p10 = pnand %p463_p6, %p182_p9 }
   0xe   : > { %p222_p11 = scmp.lt.s32.totalorder (!%p183_p10), %s646_s15, 1  ;;  %s214_s8 = sand.u32 (!%p183_p10), 1, %s638_s13  }
   0xf   : > { %186 = sbr.rel (%p183_p10) target bundleno = 269 (0x10d), region = 32  ;;  %s464_s9 = sshll.u32 (!%p183_p10), %s214_s8, 3 }
  0x10   : > { %s469_s10 = sshll.u32 (!%p183_p10), %s646_s15, 7  ;;  %s216_s11 = scalar_lea.vmem (!%p183_p10), [#allocation3], %s464_s9 }
  0x11   : > { %s363_s18 = sshll.u32 (!%p183_p10), %s216_s11, 4  ;;  %s769_s23 = scalar_lea.hbm (!%p183_p10), %s813_s3, %s469_s10  ;;  %s364_s18 = int_to_ptr.vmem [resolvable:$true] %s363_s18 }
  0x12   : > { %s349_s26 = scalar_lea.sflag (!%p183_p10), [#allocation4], %s214_s8  ;;  %s578_s27 = scalar_lea.vmem (!%p183_p10), %s364_s18, 128 }
  0x13   : > { %p579_p12 = scmp.ne.s32.totalorder (!%p183_p10), %s364_s18, %s578_s27 }
  0x14   : > { %v656_v0 = vmov 0.0   ;;  %vm657_vm0 = vmmov 0   ;;  %v238_v1 = vld [vmem:[%s812_s2] sm:$0xff]  ;;  %s223_s28 = scalar_select %p222_p11, %s646_s15, 1  ;;  %v658_v2 = vmov 0   ;;  %vm266_vm1 = vcmask 1043456  }
  0x15   : > { %487 = vmatprep.subr.mxu0 %v656_v0  ;;  %515 = vmatprep.mubr.msk.f32.mxu0 %vm657_vm0, %v656_v0  ;;  %v247_v17 = vld [vmem:[%s810_s0] sm:$0xff]  ;;  %vm262_vm2 = vcmask 883712   ;;  %vm244_vm3 = vcmask 523264   ;;  %p580_p13 = pnand %p579_p12, %p720_p4 }
  0x16   : > { %577 = vset.pattern.permute.xlu0 %v658_v2  ;;  %s518_s29 = smul.u32 112, %s223_s28  ;;  %s659_s28 = smov [#allocation3]  }
  0x17   : > { %241 = vperm.xlu0 %577, %v238_v1   ;;  %p581_p0 = pneg %p580_p13 }
  0x18   : > { %s743_s5 = scalar_lea.vmem %s811_s1, %s518_s29  ;;  %s582_s29 = sshll.u32 %s659_s28, 4  ;;  %s583_s29 = int_to_ptr.vmem [resolvable:$false] %s582_s29 }
  0x19   : > { %v261_v3 = vld [vmem:[%s743_s5 + $0x68] sm:$0xf]  ;;  %v260_v4 = vld [vmem:[%s743_s5 + $0x60] sm:$0xff]  ;;  %v259_v5 = vld [vmem:[%s743_s5 + $0x58] sm:$0xff]  ;;  %s584_s15 = scalar_lea.vmem %s583_s29, 256  ;;  %p585_p1 = scmp.lt.s32.totalorder %s364_s18, %s583_s29 }
  0x1a   : > { %488 = vmatpush3.msk.msra.mxu0 %vm266_vm1, %v261_v3  ;;  %v258_v6 = vld [vmem:[%s743_s5 + $0x50] sm:$0xff]  ;;  %v257_v7 = vld [vmem:[%s743_s5 + $0x48] sm:$0xff]  ;;  %v256_v8 = vld [vmem:[%s743_s5 + $0x40] sm:$0xff]  ;;  %p586_p2 = scmp.lt.s32.totalorder %s584_s15, %s578_s27 }
  0x1b   : > { %489 = vmatprep.subr.mxu0 %v656_v0  ;;  %v255_v9 = vld [vmem:[%s743_s5 + $0x38] sm:$0xff]  ;;  %v254_v10 = vld [vmem:[%s743_s5 + $0x30] sm:$0xff]  ;;  %v253_v11 = vld [vmem:[%s743_s5 + $0x28] sm:$0xff] }
  0x1c   : > { %490 = vmatpush3.msra.mxu0 %v260_v4  ;;  %v252_v12 = vld [vmem:[%s743_s5 + $0x20] sm:$0xff]  ;;  %v251_v13 = vld [vmem:[%s743_s5 + $0x18] sm:$0xff]  ;;  %v250_v14 = vld [vmem:[%s743_s5 + $0x10] sm:$0xff]  ;;  %p587_p3 = por %p586_p2, %p585_p1 }
  0x1d   : > { %491 = vmatprep.subr.mxu0 %v656_v0  ;;  %v249_v15 = vld [vmem:[%s743_s5 + $0x8] sm:$0xff]  ;;  %v248_v16 = vld [vmem:[%s743_s5] sm:$0xff] }
  0x1e   : > { %492 = vmatpush3.msra.mxu0 %v259_v5  ;;  %p588_p5 = pnand %p587_p3, %p581_p0 }
  0x1f   : > { %493 = vmatprep.subr.mxu0 %v656_v0 }
  0x20   : > { %494 = vmatpush3.msra.mxu0 %v258_v6 }
  0x21   : > { %495 = vmatprep.subr.mxu0 %v656_v0 }
  0x22   : > { %496 = vmatpush3.msra.mxu0 %v257_v7 }
  0x23   : > { %497 = vmatprep.subr.mxu0 %v656_v0 }
  0x24   : > { %498 = vmatpush3.msra.mxu0 %v256_v8 }
  0x25   : > { %499 = vmatprep.subr.mxu0 %v656_v0 }
  0x26   : > { %500 = vmatpush3.msra.mxu0 %v255_v9 }
  0x27   : > { %501 = vmatprep.subr.mxu0 %v656_v0 }
  0x28   : > { %502 = vmatpush3.msra.mxu0 %v254_v10 }
  0x29   : > { %503 = vmatprep.subr.mxu0 %v656_v0 }
  0x2a   : > { %504 = vmatpush3.msra.mxu0 %v253_v11 }
  0x2b   : > { %505 = vmatprep.subr.mxu0 %v656_v0 }
  0x2c   : > { %506 = vmatpush3.msra.mxu0 %v252_v12 }
  0x2d   : > { %507 = vmatprep.subr.mxu0 %v656_v0 }
  0x2e   : > { %508 = vmatpush3.msra.mxu0 %v251_v13 }
  0x2f   : > { %509 = vmatprep.subr.mxu0 %v656_v0 }
  0x30   : > { %510 = vmatpush3.msra.mxu0 %v250_v14 }
  0x31   : > { %511 = vmatprep.subr.mxu0 %v656_v0 }
  0x32   : > { %512 = vmatpush3.msra.mxu0 %v249_v15 }
  0x33   : > { %513 = vmatprep.subr.mxu0 %v656_v0 }
  0x34   : > { %514 = vmatpush3.msra.mxu0 %v248_v16 }
  0x35   : > { %516 = vmatmul.mubr.msk.f32.vlgmr.msra.gmra.mxu0 %vm262_vm2, %v247_v17 }
  0x92   : > { %v242_v18 = vpop.permute.xlu0 %241 }
  0x93   : > { %245 = vst.msk [vmem:[#allocation2] sm:$0xff] %vm244_vm3, %v242_v18 }
  0x9a   : > { %v246_v19 = vld [vmem:[#allocation2] sm:$0xff] }
  0xf5   : > { %v336_v20 = vpop.f32.mrf.mxu0 }
  0xf6   : > { %v340_v21 = vadd.f32 %v336_v20, %v246_v19 }
  0xf7   : > { %v517_v22 = vpop.f32.mrf.mxu0 }
  0xf8   : > { %342 = vst.msk [vmem:[#allocation2] sm:$0xff] %vm244_vm3, %v340_v21 }
  0xff   : > { %v346_v23 = vld [vmem:[#allocation2] sm:$0xff] }
 0x100   : > { %347 = vst.msk [vmem:[%s216_s11] sm:$0xff] %vm244_vm3, %v346_v23 }
 0x101   : > { %591 = shalt.err (!%p588_p5)
}
 0x102   : > { %s592_s30 = scalar_lea.hbm %s769_s23, 128  ;;  %s596_s6 = scalar_lea.hbm %s813_s3, 256 }
 0x103   : > { %p593_p6 = scmp.ne.s32.totalorder %s769_s23, %s592_s30  ;;  %p597_p10 = scmp.lt.s32.totalorder %s769_s23, %s813_s3 }
 0x104   : > { %p598_p11 = scmp.lt.s32.totalorder %s596_s6, %s592_s30 }
 0x105   : > { %p594_p7 = pnand %p593_p6, %p720_p4 }
 0x106   : > { %p599_p12 = por %p598_p11, %p597_p10 }
 0x107   : > { %p595_p9 = pneg %p594_p7 }
 0x109   : > { %p600_p13 = pnand %p599_p12, %p595_p9 }
 0x10b   : > { %603 = shalt.err (!%p600_p13)
}
 0x10c   : > { %519 = dma.vmem_to_hbm [thread:$0]  (%p720_p4), %s364_s18, 128, %s769_s23, %s349_s26  }
 0x10d PF: > { %p525_p0 = scmp.ge.s32.totalorder %s654_s17, 2  ;;  %s375_s9 = sand.u32 1, %s634_s12  }
 0x10e   : > { %s376_s10 = scalar_lea.sflag [#allocation4], %s375_s9 }
 0x10f   : > { %p522_p1 = pnand %p525_p0, %p727_p8 }
 0x111   : > { %p523_p2 = pneg %p522_p1 }
 0x113   : > { %629 = dma.done.wait (%p523_p2), %s376_s10, 128  }
 0x114   : > { %631 = vsyncadd (%p523_p2), %s376_s10, 4294967168  ;;  %s16_s17 = sadd.s32 1, %s654_s17   ;;  %s816_s12 = smov %s638_s13 }
 0x115   : > { %p13_p3 = scmp.ge.s32.totalorder %s16_s17, 4   ;;  %s817_s13 = smov %s642_s14 }
 0x116   : > { %s818_s14 = smov %s733_s25  ;;  %s819_s15 = smov %s650_s16 }
 0x117   : > { %s820_s16 = smov %s822_s20  ;;  %15 = sbr.rel (!%p13_p3) target bundleno = 4 (0x4), region = 78 }
 0x11c   :  { %381 = vsyncpa [#allocation4], 1 }
 0x11d   :  { %383 = vsyncpa [#allocation4 + $0x1], 1 }

</bundles_post_ra>
